<compile_context>
chip_gen: v6e
topology: v6e:2x2x1
jax: 0.10.0
libtpu: 0.0.40
codegen_flags: <defaults>
</compile_context>

<pallas_src>
import functools
import math

import jax
import jax.numpy as jnp
from jax.experimental import pallas as pl
from jax.experimental.pallas import tpu as pltpu


def _round_up(x, m):
    return ((x + m - 1) // m) * m


# ----------------------------------------------------------------------------
# Pallas kernels
# ----------------------------------------------------------------------------
def _fused_matmul_kernel(a_ref, b_ref, s_ref, c_ref, o_ref, *, relu):
    """out = act( (A @ B) * scale + bias )  -- single K block, f32 accum."""
    acc = jnp.dot(a_ref[...], b_ref[...], preferred_element_type=jnp.float32)
    y = acc * s_ref[...] + c_ref[...]
    if relu:
        y = jnp.maximum(y, 0.0)
    o_ref[...] = y.astype(o_ref.dtype)


def _fused_matmul_res_kernel(a_ref, b_ref, s_ref, c_ref, r_ref, o_ref, *, relu):
    """out = act( (A @ B) * scale + bias + residual )."""
    acc = jnp.dot(a_ref[...], b_ref[...], preferred_element_type=jnp.float32)
    y = acc * s_ref[...] + c_ref[...] + r_ref[...].astype(jnp.float32)
    if relu:
        y = jnp.maximum(y, 0.0)
    o_ref[...] = y.astype(o_ref.dtype)


def fused_matmul(a, b_p, scale_p, bias_p, *, residual=None, relu=True,
                 out_dtype=jnp.bfloat16, tm_max=256, tn_max=256):
    """a: (M, K) float; b_p: (Kp, Np) bf16 pre-padded weight matrix;
    scale_p/bias_p: (1, Np) f32; residual: (M, Cres) optional.
    Returns (M, Np) in out_dtype (caller slices logical channels)."""
    M, K = a.shape
    Kp, Np = b_p.shape
    assert Kp >= K and Kp % 128 == 0 and Np % 128 == 0

    Mp0 = _round_up(max(M, 8), 8)
    tm = min(tm_max, Mp0)
    Mp = _round_up(M, tm)
    tn = 256 if (Np % 256 == 0 and tn_max >= 256) else 128

    a_p = jnp.pad(a.astype(jnp.bfloat16), ((0, Mp - M), (0, Kp - K)))

    a_spec = pl.BlockSpec((tm, Kp), lambda i, j: (i, 0))
    b_spec = pl.BlockSpec((Kp, tn), lambda i, j: (0, j))
    v_spec = pl.BlockSpec((1, tn), lambda i, j: (0, j))
    o_spec = pl.BlockSpec((tm, tn), lambda i, j: (i, j))

    if residual is None:
        kernel = functools.partial(_fused_matmul_kernel, relu=relu)
        args = (a_p, b_p, scale_p, bias_p)
        in_specs = [a_spec, b_spec, v_spec, v_spec]
    else:
        Mr, Cr = residual.shape
        r_p = jnp.pad(residual.astype(jnp.bfloat16),
                      ((0, Mp - Mr), (0, Np - Cr)))
        kernel = functools.partial(_fused_matmul_res_kernel, relu=relu)
        args = (a_p, b_p, scale_p, bias_p, r_p)
        in_specs = [a_spec, b_spec, v_spec, v_spec, o_spec]

    out = pl.pallas_call(
        kernel,
        out_shape=jax.ShapeDtypeStruct((Mp, Np), out_dtype),
        grid=(Mp // tm, Np // tn),
        in_specs=in_specs,
        out_specs=o_spec,
        compiler_params=pltpu.CompilerParams(
            dimension_semantics=("parallel", "parallel")),
    )(*args)
    return out[:M]


def _pool_fc_kernel(x_ref, w_ref, b_ref, o_ref, *, inv_hw):
    """Global average pool over H*W fused with the FC layer (+ bias)."""
    pooled = jnp.sum(x_ref[...].astype(jnp.float32), axis=1) * inv_hw  # (N, C)
    o_ref[...] = (jnp.dot(pooled.astype(jnp.bfloat16), w_ref[...],
                          preferred_element_type=jnp.float32)
                  + b_ref[...])


def pool_fc(x_nhwc, fcp):
    """(N,H,W,C) -> (N, num_classes) via fused avgpool + FC + bias."""
    N, H, W, C = x_nhwc.shape
    HW = H * W
    Nb = _round_up(max(N, 8), 8)
    x3 = jnp.pad(x_nhwc.reshape(N, HW, C).astype(jnp.bfloat16),
                 ((0, Nb - N), (0, 0), (0, 0)))
    ncls_p = fcp['wp'].shape[1]
    out = pl.pallas_call(
        functools.partial(_pool_fc_kernel, inv_hw=1.0 / float(HW)),
        out_shape=jax.ShapeDtypeStruct((Nb, ncls_p), jnp.float32),
        grid=(1,),
        in_specs=[pl.BlockSpec((Nb, HW, C), lambda i: (0, 0, 0)),
                  pl.BlockSpec((C, ncls_p), lambda i: (0, 0)),
                  pl.BlockSpec((1, ncls_p), lambda i: (0, 0))],
        out_specs=pl.BlockSpec((Nb, ncls_p), lambda i: (0, 0)),
    )(x3, fcp['wp'], fcp['bias'])
    return out[:N, :fcp['ncls']]


# ----------------------------------------------------------------------------
# Plain-JAX glue: im2col + model plumbing
# ----------------------------------------------------------------------------
def im2col(x, kh, kw, stride, pad):
    """x: (N,H,W,C) -> ((N*Ho*Wo, kh*kw*C), Ho, Wo)."""
    N, H, W, C = x.shape
    xp = jnp.pad(x, ((0, 0), (pad, pad), (pad, pad), (0, 0)))
    Ho = (H + 2 * pad - kh) // stride + 1
    Wo = (W + 2 * pad - kw) // stride + 1
    cols = []
    for i in range(kh):
        for j in range(kw):
            cols.append(xp[:, i:i + stride * Ho:stride,
                           j:j + stride * Wo:stride, :])
    col = jnp.stack(cols, axis=3)                  # (N,Ho,Wo,kh*kw,C)
    return col.reshape(N * Ho * Wo, kh * kw * C), Ho, Wo


def conv_bn_act(x, cp, *, residual=None, relu=True):
    """NHWC conv + fused BN (+ residual) (+ ReLU) via one Pallas kernel."""
    N = x.shape[0]
    col, Ho, Wo = im2col(x, cp['kh'], cp['kw'], cp['stride'], cp['pad'])
    M = N * Ho * Wo
    r2 = None if residual is None else residual.reshape(M, residual.shape[-1])
    y = fused_matmul(col, cp['wp'], cp['scale'], cp['bias'],
                     residual=r2, relu=relu)
    return y[:, :cp['cout']].reshape(N, Ho, Wo, cp['cout'])


def basic_block(x, blk):
    identity = x
    out = conv_bn_act(x, blk['conv1'], relu=True)
    if 'down' in blk:
        identity = conv_bn_act(x, blk['down'], relu=False)
    return conv_bn_act(out, blk['conv2'], residual=identity, relu=True)


def cifar_resnet_forward(x_nchw, params):
    x = jnp.transpose(x_nchw, (0, 2, 3, 1)).astype(jnp.bfloat16)   # -> NHWC
    x = conv_bn_act(x, params['stem'], relu=True)
    for li in range(1, 5):
        for blk in params[f'layer{li}']:
            x = basic_block(x, blk)
    return pool_fc(x, params['fc'])


# ----------------------------------------------------------------------------
# Parameter init (PyTorch layout) + one-time kernel-ready preparation
# ----------------------------------------------------------------------------
def _conv_init(key, cin, cout, k):
    fan_in = cin * k * k
    return jax.random.normal(key, (cout, cin, k, k), jnp.float32) / math.sqrt(fan_in)


def _bn_init(key, c, eps=1e-5):
    k1, k2 = jax.random.split(key)
    gamma = 1.0 + 0.1 * jax.random.normal(k1, (c,), jnp.float32)
    beta = 0.1 * jax.random.normal(k2, (c,), jnp.float32)
    running_mean = jnp.zeros((c,), jnp.float32)
    running_var = jnp.ones((c,), jnp.float32)
    scale = gamma / jnp.sqrt(running_var + eps)
    bias = beta - running_mean * scale
    return scale, bias


def init_raw_params(key, num_classes=10):
    keys = iter(jax.random.split(key, 256))
    nk = lambda: next(keys)
    p = {}
    p['conv1_w'] = _conv_init(nk(), 3, 64, 7)
    p['bn1_scale'], p['bn1_bias'] = _bn_init(nk(), 64)
    layer_specs = [(64, 64, 1), (64, 128, 2), (128, 256, 2), (256, 512, 2)]
    for li, (cin, cout, stride) in enumerate(layer_specs, start=1):
        blocks = []
        for bi in range(2):                         # layers = [2, 2, 2, 2]
            s = stride if bi == 0 else 1
            bcin = cin if bi == 0 else cout
            blk = {'stride': s}
            blk['conv1_w'] = _conv_init(nk(), bcin, cout, 3)
            blk['bn1_scale'], blk['bn1_bias'] = _bn_init(nk(), cout)
            blk['conv2_w'] = _conv_init(nk(), cout, cout, 3)
            blk['bn2_scale'], blk['bn2_bias'] = _bn_init(nk(), cout)
            if bi == 0 and (s != 1 or bcin != cout):
                blk['down_w'] = _conv_init(nk(), bcin, cout, 1)
                blk['down_bn_scale'], blk['down_bn_bias'] = _bn_init(nk(), cout)
            blocks.append(blk)
        p[f'layer{li}'] = blocks
    p['fc_w'] = jax.random.normal(nk(), (num_classes, 512), jnp.float32) / math.sqrt(512)
    p['fc_b'] = 0.01 * jax.random.normal(nk(), (num_classes,), jnp.float32)
    return p


def _prep_conv(w, scale, bias, *, stride, pad):
    """(Cout,Cin,kh,kw) PyTorch weight -> padded bf16 (Kp, Np) matmul weight
    + padded f32 (1, Np) BN scale/bias. Done once at init."""
    cout, cin, kh, kw = w.shape
    K = kh * kw * cin
    Kp = _round_up(K, 128)
    Np = _round_up(cout, 128)
    w2 = jnp.transpose(w, (2, 3, 1, 0)).reshape(K, cout)
    wp = jnp.pad(w2, ((0, Kp - K), (0, Np - cout))).astype(jnp.bfloat16)
    s = jnp.pad(scale.astype(jnp.float32), (0, Np - cout)).reshape(1, Np)
    b = jnp.pad(bias.astype(jnp.float32), (0, Np - cout)).reshape(1, Np)
    return {'wp': wp, 'scale': s, 'bias': b,
            'kh': kh, 'kw': kw, 'stride': stride, 'pad': pad, 'cout': cout}


def prepare_params(raw):
    p = {}
    p['stem'] = _prep_conv(raw['conv1_w'], raw['bn1_scale'], raw['bn1_bias'],
                           stride=1, pad=3)
    for li in range(1, 5):
        blocks = []
        for blk in raw[f'layer{li}']:
            b = {}
            b['conv1'] = _prep_conv(blk['conv1_w'], blk['bn1_scale'],
                                    blk['bn1_bias'], stride=blk['stride'], pad=1)
            b['conv2'] = _prep_conv(blk['conv2_w'], blk['bn2_scale'],
                                    blk['bn2_bias'], stride=1, pad=1)
            if 'down_w' in blk:
                b['down'] = _prep_conv(blk['down_w'], blk['down_bn_scale'],
                                       blk['down_bn_bias'],
                                       stride=blk['stride'], pad=0)
            blocks.append(b)
        p[f'layer{li}'] = blocks
    ncls = raw['fc_w'].shape[0]
    ncls_p = _round_up(ncls, 128)
    fc_wp = jnp.pad(raw['fc_w'].T, ((0, 0), (0, ncls_p - ncls))).astype(jnp.bfloat16)
    fc_bp = jnp.pad(raw['fc_b'].astype(jnp.float32),
                    (0, ncls_p - ncls)).reshape(1, ncls_p)
    p['fc'] = {'wp': fc_wp, 'bias': fc_bp, 'ncls': ncls}
    return p


# ----------------------------------------------------------------------------
if __name__ == "__main__":
    key = jax.random.PRNGKey(0)
    k_x, k_p = jax.random.split(key)
    num_classes = 10
    # small input consistent with the module: NCHW, 3 input channels
    x = jax.random.normal(k_x, (2, 3, 16, 16), jnp.float32)
    raw = init_raw_params(k_p, num_classes=num_classes)
    params = prepare_params(raw)   # one-time weight transpose/pad/bf16 cast

    logits = cifar_resnet_forward(x, params)
    logits = jax.block_until_ready(logits)
    assert logits.shape == (2, num_classes)
    assert bool(jnp.all(jnp.isfinite(logits)))
    print("KERNEL_OK")
</pallas_src>

<mosaic_0001>
module attributes {stable_mosaic.version = 11 : i64} {
  func.func @_fused_matmul_kernel(%arg0: i32, %arg1: i32, %arg2: memref<256x256xbf16, #tpu.memory_space<vmem>>, %arg3: memref<256x128xbf16, #tpu.memory_space<vmem>>, %arg4: memref<1x128xf32, #tpu.memory_space<vmem>>, %arg5: memref<1x128xf32, #tpu.memory_space<vmem>>, %arg6: memref<256x128xbf16, #tpu.memory_space<vmem>>) attributes {dimension_semantics = [#tpu.dimension_semantics<parallel>, #tpu.dimension_semantics<parallel>], iteration_bounds = array<i64: 2, 1>, scalar_prefetch = 0 : i64, scratch_operands = 0 : i64, tpu.core_type = #tpu.core_type<tc>, window_params = [{transform_indices = @transform_0, window_bounds = array<i64: 256, 256>}, {transform_indices = @transform_1, window_bounds = array<i64: 256, 128>}, {transform_indices = @transform_2, window_bounds = array<i64: 1, 128>}, {transform_indices = @transform_3, window_bounds = array<i64: 1, 128>}, {transform_indices = @transform_4, window_bounds = array<i64: 256, 128>}]} {
    %c0 = arith.constant 0 : index
    %c0_0 = arith.constant 0 : index
    %0 = vector.load %arg2[%c0, %c0_0] : memref<256x256xbf16, #tpu.memory_space<vmem>>, vector<256x256xbf16>
    %c0_1 = arith.constant 0 : index
    %c0_2 = arith.constant 0 : index
    %1 = vector.load %arg3[%c0_1, %c0_2] : memref<256x128xbf16, #tpu.memory_space<vmem>>, vector<256x128xbf16>
    %cst = arith.constant dense<0.000000e+00> : vector<256x128xf32>
    %2 = tpu.matmul %0, %1, %cst {dimension_numbers = #tpu.dot_dimension_numbers<[1], [0], [0], [1], [0, 0, 1, 1], [], []>} : vector<256x256xbf16>, vector<256x128xbf16>, vector<256x128xf32> -> vector<256x128xf32>
    %c0_3 = arith.constant 0 : index
    %c0_4 = arith.constant 0 : index
    %3 = vector.load %arg4[%c0_3, %c0_4] : memref<1x128xf32, #tpu.memory_space<vmem>>, vector<1x128xf32>
    %4 = vector.broadcast %3 : vector<1x128xf32> to vector<256x128xf32>
    %5 = arith.mulf %2, %4 : vector<256x128xf32>
    %c0_5 = arith.constant 0 : index
    %c0_6 = arith.constant 0 : index
    %6 = vector.load %arg5[%c0_5, %c0_6] : memref<1x128xf32, #tpu.memory_space<vmem>>, vector<1x128xf32>
    %7 = vector.broadcast %6 : vector<1x128xf32> to vector<256x128xf32>
    %8 = arith.addf %5, %7 : vector<256x128xf32>
    %cst_7 = arith.constant 0.000000e+00 : f32
    %9 = vector.broadcast %cst_7 : f32 to vector<256x128xf32>
    %10 = arith.maximumf %8, %9 : vector<256x128xf32>
    %11 = arith.truncf %10 : vector<256x128xf32> to vector<256x128xbf16>
    %c0_8 = arith.constant 0 : index
    %c0_9 = arith.constant 0 : index
    %12 = vector.load %arg6[%c0_8, %c0_9] : memref<256x128xbf16, #tpu.memory_space<vmem>>, vector<256x128xbf16>
    tpu.vector_store %arg6[%c0_8, %c0_9], %11 {strides = array<i32>} : memref<256x128xbf16, #tpu.memory_space<vmem>>, vector<256x128xbf16>,
    return
  }
  func.func @transform_0(%arg0: i32, %arg1: i32) -> (i32, i32) {
    %c0_i32 = arith.constant 0 : i32
    %c0_i32_0 = arith.constant 0 : i32
    return %arg0, %c0_i32 : i32, i32
  }
  func.func @transform_1(%arg0: i32, %arg1: i32) -> (i32, i32) {
    %c0_i32 = arith.constant 0 : i32
    %c0_i32_0 = arith.constant 0 : i32
    return %c0_i32, %arg1 : i32, i32
  }
  func.func @transform_2(%arg0: i32, %arg1: i32) -> (i32, i32) {
    %c0_i32 = arith.constant 0 : i32
    %c0_i32_0 = arith.constant 0 : i32
    return %c0_i32, %arg1 : i32, i32
  }
  func.func @transform_3(%arg0: i32, %arg1: i32) -> (i32, i32) {
    %c0_i32 = arith.constant 0 : i32
    %c0_i32_0 = arith.constant 0 : i32
    return %c0_i32, %arg1 : i32, i32
  }
  func.func @transform_4(%arg0: i32, %arg1: i32) -> (i32, i32) {
    %c0_i32 = arith.constant 0 : i32
    return %arg0, %arg1 : i32, i32
  }
}

</mosaic_0001>

<bundles_post_ra>
// kernel: tpu_custom_call.1
= control target key start
LH: loop header
LB: loop body
LE: loop exit
PB: predicated region body
PF: predicated region fallthrough
CT: control target
= control target key end

     0   :  { %s2155_s0 = inlined_call_operand.hbm [shape: bf16[512,256], index: 0, kind: input, shape index: {}]   ;;  %s2156_s1 = inlined_call_operand.hbm [shape: bf16[256,128], index: 1, kind: input, shape index: {}]   ;;  %s2157_s2 = inlined_call_operand.vmem [shape: f32[1,128], index: 2, kind: input, shape index: {}]   ;;  %s2158_s3 = inlined_call_operand.vmem [shape: f32[1,128], index: 3, kind: input, shape index: {}]   ;;  %s2159_s4 = inlined_call_operand.hbm [shape: bf16[512,128], index: 4, kind: output, shape index: {}]  }
   0x1   :  { %2161 = sst [smem:[#allocation11_spill]] %s2156_s1 }
   0x2   :  { %9 = vsyncpa [#allocation3], 0 }
   0x3   :  { %11 = vsyncpa [#allocation3 + $0x1], 0 }
   0x4   :  { %12 = vsyncpa [#allocation6], 0 }
   0x5   :  { %13 = vsyncpa [#allocation4], 0 }
   0x6   :  { %15 = vsyncpa [#allocation4 + $0x1], 0  ;;  %s1846_s15 = smov 0   ;;  %s1848_s16 = smov 0  }
   0x7   :  { %s1850_s17 = smov 0   ;;  %s1852_s18 = smov 0  }
   0x8   :  { %s1854_s19 = smov 0   ;;  %s1856_s20 = smov 0  }
   0x9 LB: > { %s1169_s21 = sadd.s32 4294967295, %s1810_s20   ;;  %s1170_s22 = sadd.s32 4294967294, %s1810_s20   ;;  %s1810_s20 = sphi %s1856_s20, %s21_s20   ;;  %s1806_s19 = sphi %s1854_s19, %s2179_s19   ;;  %s1802_s18 = sphi %s1852_s18, %s2178_s18   ;;  %s1798_s17 = sphi %s1850_s17, %s2177_s17   ;;  %s1794_s16 = sphi %s1848_s16, %s2176_s16   ;;  %s1790_s15 = sphi %s1846_s15, %s2175_s15  }
   0xa   : > { %p53_p0 = scmp.ne.s32.totalorder %s1794_s16, %s1790_s15  ;;  %p1880_p1 = scmp.eq.s32.totalorder %s1169_s21, 0 }
   0xb   : > { %p1884_p2 = scmp.eq.s32.totalorder %s1169_s21, 1  ;;  %p163_p3 = scmp.eq.s32.totalorder %s1170_s22, 1 }
   0xc   : > { %p1890_p4 = por %p1880_p1, %p53_p0  ;;  %p1171_p5 = scmp.ge.s32.totalorder %s1810_s20, 1 }
   0xd   : > { %p1895_p6 = por %p163_p3, %p53_p0  ;;  %p170_p7 = scmp.lt.s32.totalorder %s1810_s20, 3 }
   0xe   : > { %s2164_s25 = scalar_select %p1890_p4, 1, 0 }
   0xf   : > { %s2165_s26 = scalar_select %p1895_p6, 1, 0 }
  0x10   : > { %p1900_p8 = pnand %p1171_p5, %p170_p7  ;;  %s1812_s28 = smov [#allocation5]  }
  0x11   : > { %s184_s29 = sshll.u32 %s1812_s28, 4  ;;  %s33_s5 = sadd.s32 1, %s1806_s19  ;;  %s185_s29 = int_to_ptr.vmem [resolvable:$true] %s184_s29 }
  0x12   : > { %p1537_p9 = pneg %p1900_p8  ;;  %s1683_s6 = scalar_lea.vmem %s185_s29, 2048 }
  0x13   : > { %p1684_p13 = scmp.ne.s32.totalorder %s185_s29, %s1683_s6  ;;  %p1691_p5 = scmp.lt.s32.totalorder %s185_s29, %s185_s29 }
  0x14   : > { %p1909_p11 = pnand %p1537_p9, %p1880_p1  ;;  %p1692_p7 = scmp.lt.s32.totalorder %s1683_s6, %s1683_s6 }
  0x16   : > { %p1674_p12 = pneg %p1909_p11  ;;  %p1693_p6 = por %p1692_p7, %p1691_p5 }
  0x18   : > { %p1686_p0 = pnand %p1684_p13, %p1674_p12 }
  0x1a   : > { %p1687_p3 = pneg %p1686_p0 }
  0x1c   : > { %p1694_p4 = pnand %p1693_p6, %p1687_p3 }
  0x1e   : > { %1697 = shalt.err (!%p1694_p4)
}
  0x1f   : > { %s1813_s7 = smov 64   ;;  %s1814_s8 = smov 4  }
  0x20   : > { %s2168_s1 = sld [smem:[#allocation11_spill]]  ;;  %p35_p6 = scmp.ge.s32.totalorder %s33_s5, 2 }
  0x21   : > { %s40_s11 = sadd.s32 1, %s1798_s17  ;;  %p47_p4 = scmp.ne.s32.totalorder %s1798_s17, %s1794_s16 }
  0x22   : > { %p48_p9 = scmp.eq.s32.totalorder %s1810_s20, 0  ;;  %s2181_s5 = smov (%p35_p6, %s33_s5), 0 }
  0x23   : > { %p1933_p13 = por %p1884_p2, %p47_p4  ;;  %s37_s14 = ssub.s32 %s1806_s19, %s2181_s5 }
  0x24   : > { %p1927_p12 = por %p48_p9, %p47_p4  ;;  %p1550_p0 = scmp.lt.s32.totalorder %s1810_s20, 2 }
  0x25   : > { %s210_s21 = sand.u32 1, %s1798_s17  }
  0x26   : > { %1540 = dma.hbm_to_vmem [thread:$0]  (!%p1909_p11), %s2168_s1, 2048, %s185_s29, [#allocation6], %s1813_s7, %s1813_s7, %s1814_s8  }
  0x27   : > { %p38_p11 = scmp.eq.s32.totalorder %s37_s14, 0  ;;  %s1176_s22 = sshll.u32 %s210_s21, 8 }
  0x28   : > { %s1272_s29 = sshll.u32 %s1806_s19, 12  ;;  %s214_s8 = scalar_lea.vmem [#allocation2], %s1176_s22 }
  0x29   : > { %s1942_s28 = scalar_select %p38_p11, %s1798_s17, %s40_s11  }
  0x2a   : > { %s221_s7 = scalar_lea.hbm %s2155_s0, %s1272_s29  ;;  %s222_s9 = sshll.u32 %s214_s8, 4  ;;  %s223_s9 = int_to_ptr.vmem [resolvable:$true] %s222_s9 }
  0x2b   : > { %p1950_p2 = pnand %p1550_p0, %p1927_p12  ;;  %s211_s10 = scalar_lea.sflag [#allocation3], %s210_s21 }
  0x2c   : > { %s1711_s14 = scalar_lea.vmem %s223_s9, 4096  ;;  %s1815_s11 = smov [#allocation2]  }
  0x2d   : > { %p1700_p3 = pneg %p1950_p2  ;;  %p1712_p5 = scmp.ne.s32.totalorder %s223_s9, %s1711_s14 }
  0x2e   : > { %s1716_s1 = sshll.u32 %s1815_s11, 4  ;;  %s1717_s1 = int_to_ptr.vmem [resolvable:$false] %s1716_s1 }
  0x2f   : > { %p1714_p7 = pnand %p1712_p5, %p1700_p3  ;;  %s1718_s29 = scalar_lea.vmem %s1717_s1, 8192 }
  0x30   : > { %p1719_p4 = scmp.lt.s32.totalorder %s223_s9, %s1717_s1  ;;  %p1720_p9 = scmp.lt.s32.totalorder %s1718_s29, %s1711_s14 }
  0x31   : > { %p1715_p6 = pneg %p1714_p7 }
  0x32   : > { %p1721_p11 = por %p1720_p9, %p1719_p4 }
  0x34   : > { %p1722_p10 = pnand %p1721_p11, %p1715_p6 }
  0x36   : > { %1725 = shalt.err (!%p1722_p10)
}
  0x37   : > { %s1816_s12 = smov 128   ;;  %s1817_s22 = smov 8  }
  0x38   : > { %1544 = dma.hbm_to_vmem [thread:$0]  (!%p1950_p2), %s221_s7, 4096, %s223_s9, %s211_s10, %s1816_s12, %s1816_s12, %s1817_s22  }
  0x39   : > { %234 = sbr.rel (%p1900_p8) target bundleno = 377 (0x179), region = 36  ;;  %s1961_s21 = sand.u32 (!%p1900_p8), 1, %s1794_s16  }
  0x3a   : > { %s1181_s30 = sshll.u32 (!%p1900_p8), %s1961_s21, 8  ;;  %s237_s1 = scalar_lea.sflag (!%p1900_p8), [#allocation3], %s1961_s21 }
  0x3b   : > { %s1965_s6 = scalar_lea.vmem (!%p1900_p8), [#allocation2], %s1181_s30  ;;  %p2172_p12 = scmp.ne.s32.totalorder (!%p1900_p8), %s2164_s25, 0 }
  0x3e   : > { %1777 = dma.done.wait (%p2172_p12), %s237_s1, 4096  }
  0x3f   : > { %1779 = vsyncadd (%p2172_p12), %s237_s1, 4294963200 }
  0x40   : > { %1781 = dma.done.wait (%p1880_p1), [#allocation6], 2048  }
  0x41   : > { %1783 = vsyncadd (%p1880_p1), [#allocation6], 4294965248  ;;  %v1608_v0 = vld [vmem:[#allocation5 + $0x78] sm:$0xff]   ;;  %v1610_v2 = vld [vmem:[#allocation5 + $0x70] sm:$0xff]   ;;  %s1183_s8 = sshll.u32 %s1961_s21, 7  ;;  %s1305_s24 = sshll.u32 %s1802_s18, 11 }
  0x42   : > { %v1609_v1 = vld [vmem:[#allocation5 + $0x38] sm:$0xff]   ;;  %1401 = vmatprep.subr.bf16.mxu0 %v1608_v0  ;;  %1513 = vmatprep.subr.bf16.mxu1 %v1608_v0  ;;  %v1611_v3 = vld [vmem:[#allocation5 + $0x30] sm:$0xff]   ;;  %v1612_v4 = vld [vmem:[#allocation5 + $0x68] sm:$0xff]   ;;  %s2028_s9 = scalar_lea.vmem [#allocation7], %s1183_s8  ;;  %s2103_s29 = scalar_lea.hbm %s2159_s4, %s1305_s24 }
  0x43   : > { %1402 = vmatpush3.bf16.msra.mxu0 %v1609_v1  ;;  %1521 = vmatpush3.bf16.msra.mxu1 %v1609_v1  ;;  %v1613_v5 = vld [vmem:[#allocation5 + $0x28] sm:$0xff]   ;;  %v1614_v6 = vld [vmem:[#allocation5 + $0x60] sm:$0xff]   ;;  %v1616_v8 = vld [vmem:[#allocation5 + $0x58] sm:$0xff]   ;;  %s1050_s10 = sshll.u32 %s2028_s9, 4  ;;  %s1036_s18 = scalar_lea.sflag [#allocation4], %s1961_s21  ;;  %s2105_s10 = int_to_ptr.vmem [resolvable:$true] %s1050_s10 }
  0x44   : > { %1403 = vmatprep.subr.bf16.mxu0 %v1610_v2  ;;  %1514 = vmatprep.subr.bf16.mxu1 %v1610_v2  ;;  %v1615_v7 = vld [vmem:[#allocation5 + $0x20] sm:$0xff]   ;;  %v1617_v9 = vld [vmem:[#allocation5 + $0x18] sm:$0xff]   ;;  %v1618_v10 = vld [vmem:[#allocation5 + $0x50] sm:$0xff]   ;;  %s1726_s12 = scalar_lea.vmem %s2105_s10, 2048  ;;  %s1818_s22 = smov [#allocation7]  }
  0x45   : > { %v1626_v11 = vld [vmem:[%s1965_s6 + $0x4] ss:$8 sps:$4 sm:$0xff]   ;;  %v1619_v13 = vld [vmem:[#allocation5 + $0x10] sm:$0xff]   ;;  %v1624_v18 = vld [vmem:[%s1965_s6] ss:$8 sps:$4 sm:$0xff]   ;;  %p1727_p1 = scmp.ne.s32.totalorder %s2105_s10, %s1726_s12  ;;  %s1730_s30 = sshll.u32 %s1818_s22, 4  ;;  %s1731_s30 = int_to_ptr.vmem [resolvable:$false] %s1730_s30 }
  0x46   : > { %v1629_v12 = vld [vmem:[%s1965_s6 + $0x84] ss:$8 sps:$4 sm:$0xff]   ;;  %636 = vmatprep.mubr.bf16.mxu0 %v1626_v11  ;;  %v1627_v19 = vld [vmem:[%s1965_s6 + $0x80] ss:$8 sps:$4 sm:$0xff]   ;;  %v1630_v20 = vld [vmem:[%s1965_s6 + $0x14] ss:$8 sps:$4 sm:$0xff]   ;;  %p1733_p0 = scmp.lt.s32.totalorder %s2105_s10, %s1731_s30 }
  0x47   : > { %1404 = vmatpush3.bf16.msra.mxu0 %v1611_v3  ;;  %1522 = vmatpush3.bf16.msra.mxu1 %v1611_v3  ;;  %v1620_v14 = vld [vmem:[#allocation5 + $0x48] sm:$0xff]   ;;  %v1622_v16 = vld [vmem:[#allocation5 + $0x40] sm:$0xff]   ;;  %v1632_v21 = vld [vmem:[%s1965_s6 + $0x94] ss:$8 sps:$4 sm:$0xff]   ;;  %p1728_p8 = pnand %p1727_p1, %p1933_p13  ;;  %s1732_s1 = scalar_lea.vmem %s1731_s30, 4096 }
  0x48   : > { %1405 = vmatprep.subr.bf16.mxu0 %v1612_v4  ;;  %1515 = vmatprep.subr.bf16.mxu1 %v1612_v4  ;;  %v1621_v15 = vld [vmem:[#allocation5 + $0x8] sm:$0xff]   ;;  %v1623_v17 = vld [vmem:[#allocation5] sm:$0xff]   ;;  %v1634_v22 = vld [vmem:[%s1965_s6 + $0x10] ss:$8 sps:$4 sm:$0xff]   ;;  %p1734_p2 = scmp.lt.s32.totalorder %s1732_s1, %s1726_s12 }
  0x49   : > { %700 = vmatprep.mubr.bf16.mxu1 %v1629_v12  ;;  %v1635_v23 = vld [vmem:[%s1965_s6 + $0x90] ss:$8 sps:$4 sm:$0xff]   ;;  %v1636_v24 = vld [vmem:[%s1965_s6 + $0x24] ss:$8 sps:$4 sm:$0xff]   ;;  %v1640_v26 = vld [vmem:[%s1965_s6 + $0x20] ss:$8 sps:$4 sm:$0xff]   ;;  %p1729_p10 = pneg %p1728_p8 }
  0x4a   : > { %v1638_v25 = vld [vmem:[%s1965_s6 + $0xa4] ss:$8 sps:$4 sm:$0xff]   ;;  %v1641_v27 = vld [vmem:[%s1965_s6 + $0xa0] ss:$8 sps:$4 sm:$0xff]   ;;  %v1642_v28 = vld [vmem:[%s1965_s6 + $0x34] ss:$8 sps:$4 sm:$0xff]   ;;  %p1735_p3 = por %p1734_p2, %p1733_p0 }
  0x4b   : > { %1406 = vmatpush3.bf16.msra.mxu0 %v1613_v5  ;;  %1523 = vmatpush3.bf16.msra.mxu1 %v1613_v5  ;;  %v1644_v29 = vld [vmem:[%s1965_s6 + $0xb4] ss:$8 sps:$4 sm:$0xff]   ;;  %v1646_v30 = vld [vmem:[%s1965_s6 + $0x30] ss:$8 sps:$4 sm:$0xff]   ;;  %v1648_v32 = vld [vmem:[%s1965_s6 + $0x44] ss:$8 sps:$4 sm:$0xff]  }
  0x4c   : > { %1407 = vmatprep.subr.bf16.mxu0 %v1614_v6  ;;  %1516 = vmatprep.subr.bf16.mxu1 %v1614_v6  ;;  %v1647_v31 = vld [vmem:[%s1965_s6 + $0xb0] ss:$8 sps:$4 sm:$0xff]   ;;  %v1650_v33 = vld [vmem:[%s1965_s6 + $0xc4] ss:$8 sps:$4 sm:$0xff]   ;;  %v1652_v34 = vld [vmem:[%s1965_s6 + $0x40] ss:$8 sps:$4 sm:$0xff]   ;;  %p1736_p5 = pnand %p1735_p3, %p1729_p10 }
  0x4d   : > { %v1653_v35 = vld [vmem:[%s1965_s6 + $0xc0] ss:$8 sps:$4 sm:$0xff]   ;;  %v1654_v36 = vld [vmem:[%s1965_s6 + $0x54] ss:$8 sps:$4 sm:$0xff]   ;;  %v1658_v38 = vld [vmem:[%s1965_s6 + $0x50] ss:$8 sps:$4 sm:$0xff]  }
  0x4e   : > { %v1656_v37 = vld [vmem:[%s1965_s6 + $0xd4] ss:$8 sps:$4 sm:$0xff]   ;;  %v1659_v39 = vld [vmem:[%s1965_s6 + $0xd0] ss:$8 sps:$4 sm:$0xff]   ;;  %v1660_v40 = vld [vmem:[%s1965_s6 + $0x64] ss:$8 sps:$4 sm:$0xff]  }
  0x4f   : > { %1408 = vmatpush3.bf16.msra.mxu0 %v1615_v7  ;;  %1524 = vmatpush3.bf16.msra.mxu1 %v1615_v7  ;;  %v1662_v41 = vld [vmem:[%s1965_s6 + $0xe4] ss:$8 sps:$4 sm:$0xff]   ;;  %v1664_v42 = vld [vmem:[%s1965_s6 + $0x60] ss:$8 sps:$4 sm:$0xff]   ;;  %v1666_v44 = vld [vmem:[%s1965_s6 + $0x74] ss:$8 sps:$4 sm:$0xff]  }
  0x50   : > { %1409 = vmatprep.subr.bf16.mxu0 %v1616_v8  ;;  %1517 = vmatprep.subr.bf16.mxu1 %v1616_v8  ;;  %v1665_v43 = vld [vmem:[%s1965_s6 + $0xe0] ss:$8 sps:$4 sm:$0xff]   ;;  %v1668_v45 = vld [vmem:[%s1965_s6 + $0xf4] ss:$8 sps:$4 sm:$0xff]   ;;  %v1670_v46 = vld [vmem:[%s1965_s6 + $0x70] ss:$8 sps:$4 sm:$0xff]  }
  0x51   : > { %v1671_v47 = vld [vmem:[%s1965_s6 + $0xf0] ss:$8 sps:$4 sm:$0xff]   ;;  %v2010_v51 = vld [vmem:[%s2157_s2] ss:$0 sm:$0xff] }
  0x52   : > { %v2017_v59 = vld [vmem:[%s2158_s3] ss:$0 sm:$0xff] }
  0x53   : > { %1410 = vmatpush3.bf16.msra.mxu0 %v1617_v9  ;;  %1525 = vmatpush3.bf16.msra.mxu1 %v1617_v9 }
  0x54   : > { %1411 = vmatprep.subr.bf16.mxu0 %v1618_v10  ;;  %1518 = vmatprep.subr.bf16.mxu1 %v1618_v10 }
  0x57   : > { %1412 = vmatpush3.bf16.msra.mxu0 %v1619_v13  ;;  %1526 = vmatpush3.bf16.msra.mxu1 %v1619_v13 }
  0x58   : > { %1413 = vmatprep.subr.bf16.mxu0 %v1620_v14  ;;  %1519 = vmatprep.subr.bf16.mxu1 %v1620_v14 }
  0x5b   : > { %1414 = vmatpush3.bf16.msra.mxu0 %v1621_v15  ;;  %1527 = vmatpush3.bf16.msra.mxu1 %v1621_v15 }
  0x5c   : > { %1415 = vmatprep.subr.bf16.mxu0 %v1622_v16  ;;  %1520 = vmatprep.subr.bf16.mxu1 %v1622_v16 }
  0x5f   : > { %1416 = vmatpush3.bf16.msra.mxu0 %v1623_v17  ;;  %1528 = vmatpush3.bf16.msra.mxu1 %v1623_v17 }
  0x62   : > { %637 = vmatmul.mubr.bf16.vlgmr.msra.gmra.mxu0 %v1624_v18  ;;  %701 = vmatmul.mubr.bf16.vlgmr.msra.gmra.mxu1 %v1627_v19 }
  0x63   : > { %644 = vmatprep.mubr.bf16.mxu0 %v1630_v20  ;;  %708 = vmatprep.mubr.bf16.mxu1 %v1632_v21 }
  0x6a   : > { %645 = vmatmul.mubr.bf16.gmra.mxu0 %v1634_v22  ;;  %709 = vmatmul.mubr.bf16.gmra.mxu1 %v1635_v23 }
  0x6b   : > { %652 = vmatprep.mubr.bf16.mxu0 %v1636_v24  ;;  %716 = vmatprep.mubr.bf16.mxu1 %v1638_v25 }
  0x72   : > { %653 = vmatmul.mubr.bf16.gmra.mxu0 %v1640_v26  ;;  %717 = vmatmul.mubr.bf16.gmra.mxu1 %v1641_v27 }
  0x73   : > { %660 = vmatprep.mubr.bf16.mxu0 %v1642_v28  ;;  %724 = vmatprep.mubr.bf16.mxu1 %v1644_v29 }
  0x7a   : > { %661 = vmatmul.mubr.bf16.gmra.mxu0 %v1646_v30  ;;  %725 = vmatmul.mubr.bf16.gmra.mxu1 %v1647_v31 }
  0x7b   : > { %668 = vmatprep.mubr.bf16.mxu0 %v1648_v32  ;;  %732 = vmatprep.mubr.bf16.mxu1 %v1650_v33 }
  0x82   : > { %669 = vmatmul.mubr.bf16.gmra.mxu0 %v1652_v34  ;;  %733 = vmatmul.mubr.bf16.gmra.mxu1 %v1653_v35 }
  0x83   : > { %676 = vmatprep.mubr.bf16.mxu0 %v1654_v36  ;;  %740 = vmatprep.mubr.bf16.mxu1 %v1656_v37 }
  0x8a   : > { %677 = vmatmul.mubr.bf16.gmra.mxu0 %v1658_v38  ;;  %741 = vmatmul.mubr.bf16.gmra.mxu1 %v1659_v39 }
  0x8b   : > { %684 = vmatprep.mubr.bf16.mxu0 %v1660_v40  ;;  %748 = vmatprep.mubr.bf16.mxu1 %v1662_v41 }
  0x92   : > { %685 = vmatmul.mubr.bf16.gmra.mxu0 %v1664_v42  ;;  %749 = vmatmul.mubr.bf16.gmra.mxu1 %v1665_v43 }
  0x93   : > { %692 = vmatprep.mubr.bf16.mxu0 %v1666_v44  ;;  %756 = vmatprep.mubr.bf16.mxu1 %v1668_v45 }
  0x9a   : > { %693 = vmatmul.mubr.bf16.gmra.mxu0 %v1670_v46  ;;  %757 = vmatmul.mubr.bf16.gmra.mxu1 %v1671_v47 }
 0x122   : > { %v1417_v48 = vpop.f32.mrf.mxu0  ;;  %v1465_v49 = vpop.f32.mrf.mxu1 }
 0x124   : > { %v1418_v50 = vpop.f32.mrf.mxu0  ;;  %v1466_v52 = vpop.f32.mrf.mxu1 }
 0x125   : > { %v1419_v53 = vadd.f32 %v1418_v50, %v1417_v48  ;;  %v1467_v54 = vadd.f32 %v1466_v52, %v1465_v49 }
 0x126   : > { %v1420_v55 = vpop.f32.mrf.mxu0  ;;  %v1468_v56 = vpop.f32.mrf.mxu1 }
 0x127   : > { %v772_v57 = vmul.f32 %v1419_v53, %v2010_v51  ;;  %v788_v58 = vmul.f32 %v1467_v54, %v2010_v51 }
 0x128   : > { %v1421_v60 = vpop.f32.mrf.mxu0  ;;  %v1469_v61 = vpop.f32.mrf.mxu1 }
 0x129   : > { %v1422_v62 = vadd.f32 %v1421_v60, %v1420_v55  ;;  %v1470_v63 = vadd.f32 %v1469_v61, %v1468_v56  ;;  %v811_v2 = vadd.f32 %v2017_v59, %v772_v57  ;;  %v827_v3 = vadd.f32 %v2017_v59, %v788_v58 }
 0x12a   : > { %v1423_v0 = vpop.f32.mrf.mxu0  ;;  %v1471_v1 = vpop.f32.mrf.mxu1 }
 0x12b   : > { %v773_v4 = vmul.f32 %v1422_v62, %v2010_v51  ;;  %v789_v5 = vmul.f32 %v1470_v63, %v2010_v51  ;;  %v843_v14 = vmax.f32 %v811_v2, 0.0  ;;  %v859_v15 = vmax.f32 %v827_v3, 0.0 }
 0x12c   : > { %v1424_v6 = vpop.f32.mrf.mxu0  ;;  %v1472_v7 = vpop.f32.mrf.mxu1 }
 0x12d   : > { %v812_v8 = vadd.f32 %v2017_v59, %v773_v4  ;;  %v828_v9 = vadd.f32 %v2017_v59, %v789_v5  ;;  %v1425_v10 = vadd.f32 %v1424_v6, %v1423_v0  ;;  %v1473_v11 = vadd.f32 %v1472_v7, %v1471_v1 }
 0x12e   : > { %v1426_v12 = vpop.f32.mrf.mxu0  ;;  %v1474_v13 = vpop.f32.mrf.mxu1 }
 0x12f   : > { %v844_v16 = vmax.f32 %v812_v8, 0.0  ;;  %v860_v17 = vmax.f32 %v828_v9, 0.0  ;;  %v774_v18 = vmul.f32 %v1425_v10, %v2010_v51  ;;  %v790_v19 = vmul.f32 %v1473_v11, %v2010_v51 }
 0x130   : > { %v1427_v20 = vpop.f32.mrf.mxu0  ;;  %v1475_v21 = vpop.f32.mrf.mxu1 }
 0x131   : > { %v1309_v22 = vpack.c.bf16 %v844_v16, %v843_v14  ;;  %v1349_v23 = vpack.c.bf16 %v860_v17, %v859_v15  ;;  %v1428_v24 = vadd.f32 %v1427_v20, %v1426_v12  ;;  %v1476_v25 = vadd.f32 %v1475_v21, %v1474_v13 }
 0x132   : > { %v1429_v26 = vpop.f32.mrf.mxu0  ;;  %v1477_v27 = vpop.f32.mrf.mxu1  ;;  %v813_v28 = vadd.f32 %v2017_v59, %v774_v18  ;;  %v829_v29 = vadd.f32 %v2017_v59, %v790_v19 }
 0x133   : > { %1310 = vst [vmem:[%s2028_s9] sm:$0xff] %v1309_v22   ;;  %1393 = vst [vmem:[%s2028_s9 + $0x40] sm:$0xff] %v1349_v23   ;;  %v775_v30 = vmul.f32 %v1428_v24, %v2010_v51  ;;  %v791_v31 = vmul.f32 %v1476_v25, %v2010_v51 }
 0x134   : > { %v1430_v32 = vpop.f32.mrf.mxu0  ;;  %v1478_v33 = vpop.f32.mrf.mxu1  ;;  %v845_v42 = vmax.f32 %v813_v28, 0.0  ;;  %v861_v43 = vmax.f32 %v829_v29, 0.0 }
 0x135   : > { %v1431_v34 = vadd.f32 %v1430_v32, %v1429_v26  ;;  %v1479_v35 = vadd.f32 %v1478_v33, %v1477_v27  ;;  %v814_v36 = vadd.f32 %v2017_v59, %v775_v30  ;;  %v830_v37 = vadd.f32 %v2017_v59, %v791_v31 }
 0x136   : > { %v1432_v38 = vpop.f32.mrf.mxu0  ;;  %v1480_v39 = vpop.f32.mrf.mxu1 }
 0x137   : > { %v776_v40 = vmul.f32 %v1431_v34, %v2010_v51  ;;  %v792_v41 = vmul.f32 %v1479_v35, %v2010_v51  ;;  %v846_v44 = vmax.f32 %v814_v36, 0.0  ;;  %v862_v45 = vmax.f32 %v830_v37, 0.0 }
 0x138   : > { %v1433_v46 = vpop.f32.mrf.mxu0  ;;  %v1481_v47 = vpop.f32.mrf.mxu1 }
 0x139   : > { %v1434_v48 = vadd.f32 %v1433_v46, %v1432_v38  ;;  %v1482_v49 = vadd.f32 %v1481_v47, %v1480_v39  ;;  %v1314_v50 = vpack.c.bf16 %v846_v44, %v845_v42  ;;  %v1354_v52 = vpack.c.bf16 %v862_v45, %v861_v43 }
 0x13a   : > { %v1435_v53 = vpop.f32.mrf.mxu0  ;;  %v1483_v54 = vpop.f32.mrf.mxu1  ;;  %v815_v55 = vadd.f32 %v2017_v59, %v776_v40  ;;  %v831_v56 = vadd.f32 %v2017_v59, %v792_v41 }
 0x13b   : > { %v777_v57 = vmul.f32 %v1434_v48, %v2010_v51  ;;  %v793_v58 = vmul.f32 %v1482_v49, %v2010_v51  ;;  %1386 = vst [vmem:[%s2028_s9 + $0x8] sm:$0xff] %v1314_v50   ;;  %1394 = vst [vmem:[%s2028_s9 + $0x48] sm:$0xff] %v1354_v52  }
 0x13c   : > { %v1436_v60 = vpop.f32.mrf.mxu0  ;;  %v1484_v61 = vpop.f32.mrf.mxu1  ;;  %v847_v4 = vmax.f32 %v815_v55, 0.0  ;;  %v863_v5 = vmax.f32 %v831_v56, 0.0 }
 0x13d   : > { %v816_v62 = vadd.f32 %v2017_v59, %v777_v57  ;;  %v832_v63 = vadd.f32 %v2017_v59, %v793_v58  ;;  %v1437_v0 = vadd.f32 %v1436_v60, %v1435_v53  ;;  %v1485_v1 = vadd.f32 %v1484_v61, %v1483_v54 }
 0x13e   : > { %v1438_v2 = vpop.f32.mrf.mxu0  ;;  %v1486_v3 = vpop.f32.mrf.mxu1 }
 0x13f   : > { %v848_v6 = vmax.f32 %v816_v62, 0.0  ;;  %v864_v7 = vmax.f32 %v832_v63, 0.0  ;;  %v778_v8 = vmul.f32 %v1437_v0, %v2010_v51  ;;  %v794_v9 = vmul.f32 %v1485_v1, %v2010_v51 }
 0x140   : > { %v1439_v10 = vpop.f32.mrf.mxu0  ;;  %v1487_v11 = vpop.f32.mrf.mxu1 }
 0x141   : > { %v1319_v12 = vpack.c.bf16 %v848_v6, %v847_v4  ;;  %v1359_v13 = vpack.c.bf16 %v864_v7, %v863_v5  ;;  %v1440_v14 = vadd.f32 %v1439_v10, %v1438_v2  ;;  %v1488_v15 = vadd.f32 %v1487_v11, %v1486_v3 }
 0x142   : > { %v1441_v16 = vpop.f32.mrf.mxu0  ;;  %v1489_v17 = vpop.f32.mrf.mxu1  ;;  %v817_v18 = vadd.f32 %v2017_v59, %v778_v8  ;;  %v833_v19 = vadd.f32 %v2017_v59, %v794_v9 }
 0x143   : > { %1387 = vst [vmem:[%s2028_s9 + $0x10] sm:$0xff] %v1319_v12   ;;  %1395 = vst [vmem:[%s2028_s9 + $0x50] sm:$0xff] %v1359_v13   ;;  %v779_v20 = vmul.f32 %v1440_v14, %v2010_v51  ;;  %v795_v21 = vmul.f32 %v1488_v15, %v2010_v51 }
 0x144   : > { %v1442_v22 = vpop.f32.mrf.mxu0  ;;  %v1490_v23 = vpop.f32.mrf.mxu1  ;;  %v849_v32 = vmax.f32 %v817_v18, 0.0  ;;  %v865_v33 = vmax.f32 %v833_v19, 0.0 }
 0x145   : > { %v1443_v24 = vadd.f32 %v1442_v22, %v1441_v16  ;;  %v1491_v25 = vadd.f32 %v1490_v23, %v1489_v17  ;;  %v818_v26 = vadd.f32 %v2017_v59, %v779_v20  ;;  %v834_v27 = vadd.f32 %v2017_v59, %v795_v21 }
 0x146   : > { %v1444_v28 = vpop.f32.mrf.mxu0  ;;  %v1492_v29 = vpop.f32.mrf.mxu1 }
 0x147   : > { %v780_v30 = vmul.f32 %v1443_v24, %v2010_v51  ;;  %v796_v31 = vmul.f32 %v1491_v25, %v2010_v51  ;;  %v850_v34 = vmax.f32 %v818_v26, 0.0  ;;  %v866_v35 = vmax.f32 %v834_v27, 0.0 }
 0x148   : > { %v1445_v36 = vpop.f32.mrf.mxu0  ;;  %v1493_v37 = vpop.f32.mrf.mxu1 }
 0x149   : > { %v1446_v38 = vadd.f32 %v1445_v36, %v1444_v28  ;;  %v1494_v39 = vadd.f32 %v1493_v37, %v1492_v29  ;;  %v1324_v40 = vpack.c.bf16 %v850_v34, %v849_v32  ;;  %v1364_v41 = vpack.c.bf16 %v866_v35, %v865_v33 }
 0x14a   : > { %v1447_v42 = vpop.f32.mrf.mxu0  ;;  %v1495_v43 = vpop.f32.mrf.mxu1  ;;  %v819_v44 = vadd.f32 %v2017_v59, %v780_v30  ;;  %v835_v45 = vadd.f32 %v2017_v59, %v796_v31 }
 0x14b   : > { %v781_v46 = vmul.f32 %v1446_v38, %v2010_v51  ;;  %v797_v47 = vmul.f32 %v1494_v39, %v2010_v51  ;;  %1388 = vst [vmem:[%s2028_s9 + $0x18] sm:$0xff] %v1324_v40   ;;  %1396 = vst [vmem:[%s2028_s9 + $0x58] sm:$0xff] %v1364_v41  }
 0x14c   : > { %v1448_v48 = vpop.f32.mrf.mxu0  ;;  %v1496_v49 = vpop.f32.mrf.mxu1  ;;  %v851_v57 = vmax.f32 %v819_v44, 0.0  ;;  %v867_v58 = vmax.f32 %v835_v45, 0.0 }
 0x14d   : > { %v820_v50 = vadd.f32 %v2017_v59, %v781_v46  ;;  %v836_v52 = vadd.f32 %v2017_v59, %v797_v47  ;;  %v1449_v53 = vadd.f32 %v1448_v48, %v1447_v42  ;;  %v1497_v54 = vadd.f32 %v1496_v49, %v1495_v43 }
 0x14e   : > { %v1450_v55 = vpop.f32.mrf.mxu0  ;;  %v1498_v56 = vpop.f32.mrf.mxu1 }
 0x14f   : > { %v852_v60 = vmax.f32 %v820_v50, 0.0  ;;  %v868_v61 = vmax.f32 %v836_v52, 0.0  ;;  %v782_v62 = vmul.f32 %v1449_v53, %v2010_v51  ;;  %v798_v63 = vmul.f32 %v1497_v54, %v2010_v51 }
 0x150   : > { %v1451_v0 = vpop.f32.mrf.mxu0  ;;  %v1499_v1 = vpop.f32.mrf.mxu1 }
 0x151   : > { %v1329_v2 = vpack.c.bf16 %v852_v60, %v851_v57  ;;  %v1369_v3 = vpack.c.bf16 %v868_v61, %v867_v58  ;;  %v1452_v4 = vadd.f32 %v1451_v0, %v1450_v55  ;;  %v1500_v5 = vadd.f32 %v1499_v1, %v1498_v56 }
 0x152   : > { %v1453_v6 = vpop.f32.mrf.mxu0  ;;  %v1501_v7 = vpop.f32.mrf.mxu1  ;;  %v821_v8 = vadd.f32 %v2017_v59, %v782_v62  ;;  %v837_v9 = vadd.f32 %v2017_v59, %v798_v63 }
 0x153   : > { %1389 = vst [vmem:[%s2028_s9 + $0x20] sm:$0xff] %v1329_v2   ;;  %1397 = vst [vmem:[%s2028_s9 + $0x60] sm:$0xff] %v1369_v3   ;;  %v783_v10 = vmul.f32 %v1452_v4, %v2010_v51  ;;  %v799_v11 = vmul.f32 %v1500_v5, %v2010_v51 }
 0x154   : > { %v1454_v12 = vpop.f32.mrf.mxu0  ;;  %v1502_v13 = vpop.f32.mrf.mxu1  ;;  %v853_v22 = vmax.f32 %v821_v8, 0.0  ;;  %v869_v23 = vmax.f32 %v837_v9, 0.0 }
 0x155   : > { %v1455_v14 = vadd.f32 %v1454_v12, %v1453_v6  ;;  %v1503_v15 = vadd.f32 %v1502_v13, %v1501_v7  ;;  %v822_v16 = vadd.f32 %v2017_v59, %v783_v10  ;;  %v838_v17 = vadd.f32 %v2017_v59, %v799_v11 }
 0x156   : > { %v1456_v18 = vpop.f32.mrf.mxu0  ;;  %v1504_v19 = vpop.f32.mrf.mxu1 }
 0x157   : > { %v784_v20 = vmul.f32 %v1455_v14, %v2010_v51  ;;  %v800_v21 = vmul.f32 %v1503_v15, %v2010_v51  ;;  %v854_v24 = vmax.f32 %v822_v16, 0.0  ;;  %v870_v25 = vmax.f32 %v838_v17, 0.0 }
 0x158   : > { %v1457_v26 = vpop.f32.mrf.mxu0  ;;  %v1505_v27 = vpop.f32.mrf.mxu1 }
 0x159   : > { %v1458_v28 = vadd.f32 %v1457_v26, %v1456_v18  ;;  %v1506_v29 = vadd.f32 %v1505_v27, %v1504_v19  ;;  %v1334_v30 = vpack.c.bf16 %v854_v24, %v853_v22  ;;  %v1374_v31 = vpack.c.bf16 %v870_v25, %v869_v23 }
 0x15a   : > { %v1459_v32 = vpop.f32.mrf.mxu0  ;;  %v1507_v33 = vpop.f32.mrf.mxu1  ;;  %v823_v34 = vadd.f32 %v2017_v59, %v784_v20  ;;  %v839_v35 = vadd.f32 %v2017_v59, %v800_v21 }
 0x15b   : > { %v785_v36 = vmul.f32 %v1458_v28, %v2010_v51  ;;  %v801_v37 = vmul.f32 %v1506_v29, %v2010_v51  ;;  %1390 = vst [vmem:[%s2028_s9 + $0x28] sm:$0xff] %v1334_v30   ;;  %1398 = vst [vmem:[%s2028_s9 + $0x68] sm:$0xff] %v1374_v31  }
 0x15c   : > { %v1460_v38 = vpop.f32.mrf.mxu0  ;;  %v1508_v39 = vpop.f32.mrf.mxu1  ;;  %v855_v46 = vmax.f32 %v823_v34, 0.0  ;;  %v871_v47 = vmax.f32 %v839_v35, 0.0 }
 0x15d   : > { %v824_v40 = vadd.f32 %v2017_v59, %v785_v36  ;;  %v840_v41 = vadd.f32 %v2017_v59, %v801_v37  ;;  %v1461_v42 = vadd.f32 %v1460_v38, %v1459_v32  ;;  %v1509_v43 = vadd.f32 %v1508_v39, %v1507_v33 }
 0x15e   : > { %v1462_v44 = vpop.f32.mrf.mxu0  ;;  %v1510_v45 = vpop.f32.mrf.mxu1 }
 0x15f   : > { %v856_v48 = vmax.f32 %v824_v40, 0.0  ;;  %v872_v49 = vmax.f32 %v840_v41, 0.0  ;;  %v786_v50 = vmul.f32 %v1461_v42, %v2010_v51  ;;  %v802_v52 = vmul.f32 %v1509_v43, %v2010_v51 }
 0x160   : > { %v1463_v53 = vpop.f32.mrf.mxu0  ;;  %v1511_v54 = vpop.f32.mrf.mxu1 }
 0x161   : > { %v1339_v55 = vpack.c.bf16 %v856_v48, %v855_v46  ;;  %v1379_v56 = vpack.c.bf16 %v872_v49, %v871_v47  ;;  %v1464_v57 = vadd.f32 %v1463_v53, %v1462_v44  ;;  %v1512_v58 = vadd.f32 %v1511_v54, %v1510_v45 }
 0x162   : > { %v825_v60 = vadd.f32 %v2017_v59, %v786_v50  ;;  %v841_v61 = vadd.f32 %v2017_v59, %v802_v52 }
 0x163   : > { %1391 = vst [vmem:[%s2028_s9 + $0x30] sm:$0xff] %v1339_v55   ;;  %1399 = vst [vmem:[%s2028_s9 + $0x70] sm:$0xff] %v1379_v56   ;;  %v787_v62 = vmul.f32 %v1464_v57, %v2010_v51  ;;  %v803_v63 = vmul.f32 %v1512_v58, %v2010_v51 }
 0x164   : > { %v857_v2 = vmax.f32 %v825_v60, 0.0  ;;  %v873_v3 = vmax.f32 %v841_v61, 0.0 }
 0x165   : > { %v826_v0 = vadd.f32 %v2017_v59, %v787_v62  ;;  %v842_v1 = vadd.f32 %v2017_v59, %v803_v63 }
 0x167   : > { %v858_v4 = vmax.f32 %v826_v0, 0.0  ;;  %v874_v5 = vmax.f32 %v842_v1, 0.0 }
 0x169   : > { %v1344_v51 = vpack.c.bf16 %v858_v4, %v857_v2  ;;  %v1384_v6 = vpack.c.bf16 %v874_v5, %v873_v3 }
 0x16b   : > { %1392 = vst [vmem:[%s2028_s9 + $0x38] sm:$0xff] %v1344_v51   ;;  %1400 = vst [vmem:[%s2028_s9 + $0x78] sm:$0xff] %v1384_v6  }
 0x16c   : > { %1739 = shalt.err (!%p1736_p5)
}
 0x16d   : > { %s1740_s6 = scalar_lea.hbm %s2103_s29, 2048  ;;  %s1744_s27 = scalar_lea.hbm %s2159_s4, 4096 }
 0x16e   : > { %p1741_p7 = scmp.ne.s32.totalorder %s2103_s29, %s1740_s6  ;;  %p1745_p9 = scmp.lt.s32.totalorder %s2103_s29, %s2159_s4 }
 0x16f   : > { %p1746_p11 = scmp.lt.s32.totalorder %s1744_s27, %s1740_s6 }
 0x170   : > { %p1742_p6 = pnand %p1741_p7, %p1933_p13 }
 0x171   : > { %p1747_p12 = por %p1746_p11, %p1745_p9 }
 0x172   : > { %p1743_p4 = pneg %p1742_p6 }
 0x174   : > { %p1748_p1 = pnand %p1747_p12, %p1743_p4 }
 0x176   : > { %1751 = shalt.err (!%p1748_p1)
}
 0x177   : > { %s1819_s9 = smov 64   ;;  %s1820_s24 = smov 4  }
 0x178   : > { %1535 = dma.vmem_to_hbm [thread:$0]  (%p1933_p13), %s2105_s10, 2048, %s2103_s29, %s1036_s18, %s1819_s9, %s1819_s9, %s1820_s24  }
 0x179 PF: > { %s1065_s14 = sand.u32 1, %s1790_s15   ;;  %p2173_p8 = scmp.ne.s32.totalorder %s2165_s26, 0 }
 0x17a   : > { %p2174_p10 = scmp.ge.s32.totalorder %s1810_s20, 2  ;;  %s1066_s11 = scalar_lea.sflag [#allocation4], %s1065_s14 }
 0x17c   : > { %p1546_p0 = pnand %p2174_p10, %p2173_p8 }
 0x17e   : > { %p1547_p2 = pneg %p1546_p0 }
 0x180   : > { %1785 = dma.done.wait (%p1547_p2), %s1066_s11, 2048  }
 0x181   : > { %1787 = vsyncadd (%p1547_p2), %s1066_s11, 4294965248  ;;  %s21_s20 = sadd.s32 1, %s1810_s20   ;;  %s2175_s15 = smov %s1794_s16 }
 0x182   : > { %p18_p3 = scmp.ge.s32.totalorder %s21_s20, 4   ;;  %s2176_s16 = smov %s1798_s17 }
 0x183   : > { %s2177_s17 = smov %s1942_s28  ;;  %s2178_s18 = smov %s1806_s19 }
 0x184   : > { %s2179_s19 = smov %s2181_s5  ;;  %20 = sbr.rel (!%p18_p3) target bundleno = 9 (0x9), region = 92 }
 0x189   :  { %1071 = vsyncpa [#allocation3], 1 }
 0x18a   :  { %1073 = vsyncpa [#allocation3 + $0x1], 1 }
 0x18b   :  { %1074 = vsyncpa [#allocation6], 1 }
 0x18c   :  { %1075 = vsyncpa [#allocation4], 1 }
 0x18d   :  { %1077 = vsyncpa [#allocation4 + $0x1], 1 }

</bundles_post_ra>
